<compile_context>
chip_gen: v5e
topology: v5e:2x2
jax: 0.10.0
libtpu: 0.0.40
codegen_flags: <defaults>
</compile_context>

<pallas_src>
import functools
import math

import jax
import jax.numpy as jnp
from jax import lax
from jax.experimental import pallas as pl
from jax.experimental.pallas import tpu as pltpu


def _round_up(x, m):
    return (x + m - 1) // m * m


def _gen_params():
    """Generation-aware (target logits-block bytes, vmem_limit_bytes)."""
    cap = None
    try:
        info = pltpu.get_tpu_info()
        cap = getattr(info, "vmem_capacity_bytes", None)
    except Exception:
        cap = None
    if cap is not None and int(cap) <= (64 << 20):
        # v7x-class: 64 MiB VMEM per TensorCore -> smaller blocks, tight limit.
        return 2 << 20, 48 << 20
    # v5e / v6e: 128 MiB VMEM -> bigger blocks, explicit (not default) limit.
    return 4 << 20, 96 << 20


def _rows_per_tile(rows, n_ch, itemsize, target_bytes):
    """Rows of 128 pixels per grid step so one logits block is ~target_bytes."""
    rt = target_bytes // max(1, n_ch * 128 * itemsize)
    rt = max(8, (rt // 8) * 8)          # multiple of 8 (sublane tiling)
    rt = min(rt, 4096)                  # bound in-kernel f32 temporaries
    if rt >= rows:
        return rows                     # block dim == full dim is always legal
    return rt


# ---------------------------------------------------------------------------
# Multi-class cross-entropy kernel: per-class accumulation over (rt,128) slabs.
# ---------------------------------------------------------------------------
def _ce_kernel(x_ref, t_ref, w_ref, *out_refs, C, eps, ignore_index,
               use_weight, emit_rows, rows_total, rt):
    t = t_ref[0, 0]                                        # (rt, 128) int32

    # Tail mask for the (possibly) partial last row-tile of the grid.
    row0 = pl.program_id(1) * rt
    ridx = lax.broadcasted_iota(jnp.int32, (rt, 128), 0)
    in_bounds = (row0 + ridx) < rows_total
    valid = jnp.logical_and(in_bounds, t != ignore_index)

    # Running max over classes (pure VPU, full vreg width).
    m = x_ref[0, 0].astype(jnp.float32)
    for c in range(1, C):
        m = jnp.maximum(m, x_ref[0, c].astype(jnp.float32))

    s = jnp.zeros((rt, 128), jnp.float32)        # sum exp(x_c - m)
    x_t = jnp.zeros((rt, 128), jnp.float32)      # logit of the target class
    w_t = jnp.zeros((rt, 128), jnp.float32)      # weight of the target class
    xw_sum = jnp.zeros((rt, 128), jnp.float32)   # sum_c w_c * x_c (smoothing)
    w_total = 0.0
    for c in range(C):
        xc = x_ref[0, c].astype(jnp.float32)
        s = s + jnp.exp(xc - m)
        sel = (t == c)
        x_t = jnp.where(sel, xc, x_t)
        if use_weight:
            wc = w_ref[c]                        # scalar read from SMEM
            w_t = jnp.where(sel, wc, w_t)
            w_total = w_total + wc
            if eps > 0.0:
                xw_sum = xw_sum + wc * xc
        elif eps > 0.0:
            xw_sum = xw_sum + xc

    lse = m + jnp.log(s)                         # log-sum-exp per pixel
    nll = lse - x_t                              # -log p_target (no logp tensor)

    if use_weight:
        base = w_t * nll
    else:
        base = nll

    if eps > 0.0:
        if use_weight:
            smooth = lse * w_total - xw_sum      # sum_c w_c * (-logp_c)
        else:
            smooth = lse * float(C) - xw_sum
        loss = (1.0 - eps) * base + (eps / C) * smooth
    else:
        loss = base

    loss = jnp.where(valid, loss, 0.0)           # select: kills NaN/garbage lanes

    if emit_rows:
        (rows_ref,) = out_refs
        rows_ref[...] = loss.reshape(1, rt, 128)
    else:
        sum_ref, den_ref = out_refs
        if use_weight:
            den = jnp.where(valid, w_t, 0.0)
        else:
            den = valid.astype(jnp.float32)
        sum_ref[...] = jnp.full((1, 1, 1, 128), jnp.sum(loss), jnp.float32)
        den_ref[...] = jnp.full((1, 1, 1, 128), jnp.sum(den), jnp.float32)


def _ce_pallas(x4, t4, w_c, *, ignore_index, label_smoothing, emit_rows, rt,
               vmem_limit):
    B, C, R, _ = x4.shape
    nt = pl.cdiv(R, rt)
    use_weight = w_c is not None
    if w_c is None:
        w_c = jnp.ones((C,), jnp.float32)

    kernel = functools.partial(
        _ce_kernel, C=C, eps=float(label_smoothing), ignore_index=ignore_index,
        use_weight=use_weight, emit_rows=emit_rows, rows_total=R, rt=rt)

    in_specs = [
        pl.BlockSpec((1, C, rt, 128), lambda b, j: (b, 0, j, 0)),
        pl.BlockSpec((1, 1, rt, 128), lambda b, j: (b, 0, j, 0)),
        pl.BlockSpec(memory_space=pltpu.MemorySpace.SMEM),      # (C,) weights
    ]

    if emit_rows:
        out_shape = jax.ShapeDtypeStruct((B, R, 128), jnp.float32)
        out_specs = pl.BlockSpec((1, rt, 128), lambda b, j: (b, j, 0))
    else:
        out_shape = (jax.ShapeDtypeStruct((B, nt, 1, 128), jnp.float32),
                     jax.ShapeDtypeStruct((B, nt, 1, 128), jnp.float32))
        out_specs = (pl.BlockSpec((1, 1, 1, 128), lambda b, j: (b, j, 0, 0)),
                     pl.BlockSpec((1, 1, 1, 128), lambda b, j: (b, j, 0, 0)))

    return pl.pallas_call(
        kernel,
        out_shape=out_shape,
        grid_spec=pltpu.PrefetchScalarGridSpec(
            num_scalar_prefetch=0,
            grid=(B, nt),
            in_specs=in_specs,
            out_specs=out_specs),
        compiler_params=pltpu.CompilerParams(
            dimension_semantics=("parallel", "parallel"),
            vmem_limit_bytes=vmem_limit),
    )(x4, t4, w_c)


# ---------------------------------------------------------------------------
# Binary path: BCE-with-logits (stable formulation), (rt,128) lane-dense slabs.
# ---------------------------------------------------------------------------
def _bce_kernel(x_ref, t_ref, *out_refs, total_n, rt, emit_rows):
    x = x_ref[...].astype(jnp.float32)                     # (rt, 128)
    t = t_ref[...].astype(jnp.float32)
    # max(x,0) - x*t + log(1 + exp(-|x|))
    loss = jnp.maximum(x, 0.0) - x * t + jnp.log1p(jnp.exp(-jnp.abs(x)))

    if emit_rows:
        (rows_ref,) = out_refs
        rows_ref[...] = loss                               # tail sliced by caller
    else:
        (sum_ref,) = out_refs
        base = pl.program_id(0) * (rt * 128)
        ridx = lax.broadcasted_iota(jnp.int32, (rt, 128), 0)
        lidx = lax.broadcasted_iota(jnp.int32, (rt, 128), 1)
        loss = jnp.where(base + ridx * 128 + lidx < total_n, loss, 0.0)
        sum_ref[...] = jnp.full((1, 1, 128), jnp.sum(loss), jnp.float32)


def _bce_pallas(x2, t2, *, emit_rows, total_n, rt, vmem_limit):
    R = x2.shape[0]
    nt = pl.cdiv(R, rt)
    kernel = functools.partial(_bce_kernel, total_n=total_n, rt=rt,
                               emit_rows=emit_rows)
    in_specs = [pl.BlockSpec((rt, 128), lambda i: (i, 0)),
                pl.BlockSpec((rt, 128), lambda i: (i, 0))]
    if emit_rows:
        out_shape = jax.ShapeDtypeStruct((R, 128), jnp.float32)
        out_specs = pl.BlockSpec((rt, 128), lambda i: (i, 0))
    else:
        out_shape = jax.ShapeDtypeStruct((nt, 1, 128), jnp.float32)
        out_specs = pl.BlockSpec((1, 1, 128), lambda i: (i, 0, 0))

    return pl.pallas_call(
        kernel,
        out_shape=out_shape,
        grid_spec=pltpu.PrefetchScalarGridSpec(
            num_scalar_prefetch=0,
            grid=(nt,),
            in_specs=in_specs,
            out_specs=out_specs),
        compiler_params=pltpu.CompilerParams(
            dimension_semantics=("parallel",),
            vmem_limit_bytes=vmem_limit),
    )(x2, t2)


# ---------------------------------------------------------------------------
# Module-equivalent wrapper (mirrors CrossEntropyLoss.forward).
# ---------------------------------------------------------------------------
class CrossEntropyLoss:
    def __init__(self, weight=None, ignore_index=-100, reduction='mean',
                 label_smoothing=0.0):
        self.weight = weight
        self.ignore_index = ignore_index
        self.reduction = reduction
        self.label_smoothing = label_smoothing

    def __call__(self, inputs, targets):
        C = inputs.shape[1]
        target_bytes, vmem_limit = _gen_params()

        if C == 1:
            # ---- binary segmentation: BCEWithLogitsLoss ----
            if targets.ndim == inputs.ndim - 1:
                t = jnp.expand_dims(targets, 1)
            else:
                t = targets
            N = inputs.size
            x_flat = inputs.reshape(-1)                    # native dtype, no cast
            t_flat = t.reshape(-1)
            if t_flat.dtype == jnp.bool_:
                t_flat = t_flat.astype(jnp.int32)
            Np = _round_up(N, 128)
            if Np != N:
                # TODO(synk): pad path — one extra HBM pass, only when N % 128.
                x_flat = jnp.pad(x_flat, (0, Np - N))
                t_flat = jnp.pad(t_flat, (0, Np - N))
            R = Np // 128
            x2 = x_flat.reshape(R, 128)                    # free reshape
            t2 = t_flat.reshape(R, 128)
            rt = _rows_per_tile(R, 1, x2.dtype.itemsize, target_bytes)

            if self.reduction == 'none':
                rows = _bce_pallas(x2, t2, emit_rows=True, total_n=N, rt=rt,
                                   vmem_limit=vmem_limit)
                return rows.reshape(-1)[:N].reshape(inputs.shape)
            sums = _bce_pallas(x2, t2, emit_rows=False, total_n=N, rt=rt,
                               vmem_limit=vmem_limit)
            loss_sum = jnp.sum(sums[:, 0, 0])
            if self.reduction == 'mean':
                return loss_sum / N
            return loss_sum
        else:
            # ---- multi-class segmentation: CrossEntropyLoss ----
            t = targets
            if t.ndim == inputs.ndim:
                t = jnp.squeeze(t, axis=1)
            t = t.astype(jnp.int32)
            B = inputs.shape[0]
            S = math.prod(inputs.shape[2:])
            x = inputs.reshape(B, C, S)                    # free reshape, no cast
            t3 = t.reshape(B, 1, S)
            Sp = _round_up(S, 128)
            if Sp != S:
                # TODO(synk): pad path — one extra HBM pass, only when S % 128.
                x = jnp.pad(x, ((0, 0), (0, 0), (0, Sp - S)))
                t3 = jnp.pad(t3, ((0, 0), (0, 0), (0, Sp - S)),
                             constant_values=self.ignore_index)
            R = Sp // 128
            x4 = x.reshape(B, C, R, 128)                   # free when S % 128 == 0
            t4 = t3.reshape(B, 1, R, 128)
            rt = _rows_per_tile(R, C, x4.dtype.itemsize, target_bytes)
            w_c = None
            if self.weight is not None:
                w_c = jnp.asarray(self.weight, jnp.float32).reshape(C)

            if self.reduction == 'none':
                rows = _ce_pallas(x4, t4, w_c,
                                  ignore_index=self.ignore_index,
                                  label_smoothing=self.label_smoothing,
                                  emit_rows=True, rt=rt, vmem_limit=vmem_limit)
                return rows.reshape(B, Sp)[:, :S].reshape(t.shape)
            psum, pden = _ce_pallas(x4, t4, w_c,
                                    ignore_index=self.ignore_index,
                                    label_smoothing=self.label_smoothing,
                                    emit_rows=False, rt=rt,
                                    vmem_limit=vmem_limit)
            loss_sum = jnp.sum(psum[:, :, 0, 0])
            if self.reduction == 'mean':
                return loss_sum / jnp.sum(pden[:, :, 0, 0])
            return loss_sum


# ---------------------------------------------------------------------------
# Pure-JAX references for verification.
# ---------------------------------------------------------------------------
def _ref_ce(logits, targets, weight=None, ignore_index=-100, label_smoothing=0.0,
            reduction='mean'):
    C = logits.shape[1]
    perm = (0,) + tuple(range(2, logits.ndim)) + (1,)
    x = jnp.transpose(logits, perm).reshape(-1, C).astype(jnp.float32)
    t = targets.reshape(-1)
    logp = jax.nn.log_softmax(x, axis=-1)
    valid = (t != ignore_index)
    t_safe = jnp.where(valid, t, 0)
    nll = -jnp.take_along_axis(logp, t_safe[:, None], axis=-1)[:, 0]
    if weight is not None:
        w = jnp.asarray(weight, jnp.float32)
        w_t = w[t_safe]
        smooth = -jnp.sum(logp * w[None, :], axis=-1)
    else:
        w_t = jnp.ones_like(nll)
        smooth = -jnp.sum(logp, axis=-1)
    eps = label_smoothing
    loss = (1.0 - eps) * w_t * nll + (eps / C) * smooth
    loss = jnp.where(valid, loss, 0.0)
    if reduction == 'mean':
        return jnp.sum(loss) / jnp.sum(jnp.where(valid, w_t, 0.0))
    if reduction == 'sum':
        return jnp.sum(loss)
    return loss.reshape(targets.shape)


def _ref_bce(logits, targets, reduction='mean'):
    x = logits.astype(jnp.float32)
    t = targets.astype(jnp.float32)
    loss = jnp.maximum(x, 0.0) - x * t + jnp.log1p(jnp.exp(-jnp.abs(x)))
    if reduction == 'mean':
        return jnp.mean(loss)
    if reduction == 'sum':
        return jnp.sum(loss)
    return loss


def _close(a, b, tol=1e-4):
    a = jnp.asarray(a, jnp.float32)
    b = jnp.asarray(b, jnp.float32)
    return bool(jnp.all(jnp.abs(a - b) <= tol * (1.0 + jnp.abs(b))))


if __name__ == "__main__":
    key = jax.random.PRNGKey(0)
    k1, k2, k3, k4, k5, k6 = jax.random.split(key, 6)

    B, C, H, W = 2, 4, 16, 16
    logits = jax.random.normal(k1, (B, C, H, W), jnp.float32)
    targets = jax.random.randint(k2, (B, H, W), 0, C).astype(jnp.int32)
    targets = targets.at[0, 0, :4].set(-100)          # exercise ignore_index

    # 1) multi-class, mean, no weight / no smoothing
    out1 = jax.block_until_ready(CrossEntropyLoss(ignore_index=-100)(logits, targets))
    assert _close(out1, _ref_ce(logits, targets)), "CE mean mismatch"

    # 2) multi-class, mean, class weights + label smoothing
    w = jnp.array([0.5, 1.0, 2.0, 1.5], jnp.float32)
    out2 = jax.block_until_ready(
        CrossEntropyLoss(weight=w, ignore_index=-100, label_smoothing=0.1)(logits, targets))
    assert _close(out2, _ref_ce(logits, targets, weight=w, label_smoothing=0.1)), \
        "CE weighted/smoothed mismatch"

    # 3) multi-class, label smoothing without weights
    out3 = jax.block_until_ready(
        CrossEntropyLoss(label_smoothing=0.1)(logits, targets))
    assert _close(out3, _ref_ce(logits, targets, label_smoothing=0.1)), \
        "CE smoothed mismatch"

    # 4) multi-class, reduction='none' and 'sum'
    out4 = jax.block_until_ready(CrossEntropyLoss(reduction='none')(logits, targets))
    assert _close(out4, _ref_ce(logits, targets, reduction='none')), "CE none mismatch"
    out4s = jax.block_until_ready(CrossEntropyLoss(reduction='sum')(logits, targets))
    assert _close(out4s, _ref_ce(logits, targets, reduction='sum')), "CE sum mismatch"

    # 5) multi-class with spatial size not a multiple of 128 (pad/mask path)
    logits_o = jax.random.normal(k5, (B, C, 15, 15), jnp.float32)
    targets_o = jax.random.randint(k6, (B, 15, 15), 0, C).astype(jnp.int32)
    out5 = jax.block_until_ready(CrossEntropyLoss()(logits_o, targets_o))
    assert _close(out5, _ref_ce(logits_o, targets_o)), "CE odd-S mismatch"

    # 6) binary path, mean and 'none'
    logits_b = jax.random.normal(k3, (B, 1, H, W), jnp.float32)
    targets_b = jax.random.randint(k4, (B, H, W), 0, 2).astype(jnp.int32)
    out6 = jax.block_until_ready(CrossEntropyLoss()(logits_b, targets_b))
    assert _close(out6, _ref_bce(logits_b, targets_b[:, None])), "BCE mean mismatch"
    out7 = jax.block_until_ready(CrossEntropyLoss(reduction='none')(logits_b, targets_b))
    assert _close(out7, _ref_bce(logits_b, targets_b[:, None], reduction='none')), \
        "BCE none mismatch"

    # 7) binary path with element count not a multiple of 128 (mask path)
    logits_bo = jax.random.normal(k5, (B, 1, 15, 15), jnp.float32)
    targets_bo = jax.random.randint(k6, (B, 15, 15), 0, 2).astype(jnp.int32)
    out8 = jax.block_until_ready(CrossEntropyLoss()(logits_bo, targets_bo))
    assert _close(out8, _ref_bce(logits_bo, targets_bo[:, None])), "BCE odd-N mismatch"

    print("KERNEL_OK")
</pallas_src>

<mosaic_0001>
module attributes {stable_mosaic.version = 11 : i64} {
  func.func @_ce_kernel(%arg0: i32, %arg1: i32, %arg2: memref<1x4x2x128xf32, #tpu.memory_space<vmem>>, %arg3: memref<1x1x2x128xi32, #tpu.memory_space<vmem>>, %arg4: memref<4xf32, #tpu.memory_space<smem>>, %arg5: memref<1x1x1x128xf32, #tpu.memory_space<vmem>>, %arg6: memref<1x1x1x128xf32, #tpu.memory_space<vmem>>) attributes {dimension_semantics = [#tpu.dimension_semantics<parallel>, #tpu.dimension_semantics<parallel>], iteration_bounds = array<i64: 2, 1>, scalar_prefetch = 0 : i64, scratch_operands = 0 : i64, tpu.core_type = #tpu.core_type<tc>, window_params = [{transform_indices = @transform_0, window_bounds = array<i64: 1, 4, 2, 128>}, {transform_indices = @transform_1, window_bounds = array<i64: 1, 1, 2, 128>}, {transform_indices = @transform_2, window_bounds = array<i64: 4>}, {transform_indices = @transform_3, window_bounds = array<i64: 1, 1, 1, 128>}, {transform_indices = @transform_4, window_bounds = array<i64: 1, 1, 1, 128>}]} {
    %c0 = arith.constant 0 : index
    %c0_0 = arith.constant 0 : index
    %c0_1 = arith.constant 0 : index
    %c0_2 = arith.constant 0 : index
    %0 = vector.load %arg3[%c0, %c0_0, %c0_1, %c0_2] : memref<1x1x2x128xi32, #tpu.memory_space<vmem>>, vector<1x1x2x128xi32>
    %1 = vector.shape_cast %0 : vector<1x1x2x128xi32> to vector<2x128xi32>
    %c2_i32 = arith.constant 2 : i32
    %2 = arith.muli %arg1, %c2_i32 : i32
    %3 = tpu.iota {dimensions = array<i32: 0>} : vector<2x128xi32>
    %4 = vector.broadcast %2 : i32 to vector<2x128xi32>
    %5 = arith.addi %4, %3 : vector<2x128xi32>
    %c2_i32_3 = arith.constant 2 : i32
    %6 = vector.broadcast %c2_i32_3 : i32 to vector<2x128xi32>
    %7 = arith.cmpi slt, %5, %6 : vector<2x128xi32>
    %c-100_i32 = arith.constant -100 : i32
    %8 = vector.broadcast %c-100_i32 : i32 to vector<2x128xi32>
    %9 = arith.cmpi ne, %1, %8 : vector<2x128xi32>
    %10 = arith.andi %7, %9 : vector<2x128xi1>
    %c0_4 = arith.constant 0 : index
    %c0_5 = arith.constant 0 : index
    %c0_6 = arith.constant 0 : index
    %c0_7 = arith.constant 0 : index
    %11 = vector.load %arg2[%c0_4, %c0_5, %c0_6, %c0_7] : memref<1x4x2x128xf32, #tpu.memory_space<vmem>>, vector<1x1x2x128xf32>
    %12 = vector.shape_cast %11 : vector<1x1x2x128xf32> to vector<2x128xf32>
    %c0_8 = arith.constant 0 : index
    %c1 = arith.constant 1 : index
    %c0_9 = arith.constant 0 : index
    %c0_10 = arith.constant 0 : index
    %13 = vector.load %arg2[%c0_8, %c1, %c0_9, %c0_10] : memref<1x4x2x128xf32, #tpu.memory_space<vmem>>, vector<1x1x2x128xf32>
    %14 = vector.shape_cast %13 : vector<1x1x2x128xf32> to vector<2x128xf32>
    %15 = arith.maximumf %12, %14 : vector<2x128xf32>
    %c0_11 = arith.constant 0 : index
    %c2 = arith.constant 2 : index
    %c0_12 = arith.constant 0 : index
    %c0_13 = arith.constant 0 : index
    %16 = vector.load %arg2[%c0_11, %c2, %c0_12, %c0_13] : memref<1x4x2x128xf32, #tpu.memory_space<vmem>>, vector<1x1x2x128xf32>
    %17 = vector.shape_cast %16 : vector<1x1x2x128xf32> to vector<2x128xf32>
    %18 = arith.maximumf %15, %17 : vector<2x128xf32>
    %c0_14 = arith.constant 0 : index
    %c3 = arith.constant 3 : index
    %c0_15 = arith.constant 0 : index
    %c0_16 = arith.constant 0 : index
    %19 = vector.load %arg2[%c0_14, %c3, %c0_15, %c0_16] : memref<1x4x2x128xf32, #tpu.memory_space<vmem>>, vector<1x1x2x128xf32>
    %20 = vector.shape_cast %19 : vector<1x1x2x128xf32> to vector<2x128xf32>
    %21 = arith.maximumf %18, %20 : vector<2x128xf32>
    %cst = arith.constant 0.000000e+00 : f32
    %22 = vector.broadcast %cst : f32 to vector<2x128xf32>
    %cst_17 = arith.constant 0.000000e+00 : f32
    %23 = vector.broadcast %cst_17 : f32 to vector<2x128xf32>
    %c0_18 = arith.constant 0 : index
    %c0_19 = arith.constant 0 : index
    %c0_20 = arith.constant 0 : index
    %c0_21 = arith.constant 0 : index
    %24 = vector.load %arg2[%c0_18, %c0_19, %c0_20, %c0_21] : memref<1x4x2x128xf32, #tpu.memory_space<vmem>>, vector<1x1x2x128xf32>
    %25 = vector.shape_cast %24 : vector<1x1x2x128xf32> to vector<2x128xf32>
    %26 = arith.subf %25, %21 : vector<2x128xf32>
    %27 = math.exp %26 : vector<2x128xf32>
    %28 = arith.addf %22, %27 : vector<2x128xf32>
    %c0_i32 = arith.constant 0 : i32
    %29 = vector.broadcast %c0_i32 : i32 to vector<2x128xi32>
    %30 = arith.cmpi eq, %1, %29 : vector<2x128xi32>
    %31 = arith.select %30, %25, %23 : vector<2x128xi1>, vector<2x128xf32>
    %c0_22 = arith.constant 0 : index
    %c1_23 = arith.constant 1 : index
    %c0_24 = arith.constant 0 : index
    %c0_25 = arith.constant 0 : index
    %32 = vector.load %arg2[%c0_22, %c1_23, %c0_24, %c0_25] : memref<1x4x2x128xf32, #tpu.memory_space<vmem>>, vector<1x1x2x128xf32>
    %33 = vector.shape_cast %32 : vector<1x1x2x128xf32> to vector<2x128xf32>
    %34 = arith.subf %33, %21 : vector<2x128xf32>
    %35 = math.exp %34 : vector<2x128xf32>
    %36 = arith.addf %28, %35 : vector<2x128xf32>
    %c1_i32 = arith.constant 1 : i32
    %37 = vector.broadcast %c1_i32 : i32 to vector<2x128xi32>
    %38 = arith.cmpi eq, %1, %37 : vector<2x128xi32>
    %39 = arith.select %38, %33, %31 : vector<2x128xi1>, vector<2x128xf32>
    %c0_26 = arith.constant 0 : index
    %c2_27 = arith.constant 2 : index
    %c0_28 = arith.constant 0 : index
    %c0_29 = arith.constant 0 : index
    %40 = vector.load %arg2[%c0_26, %c2_27, %c0_28, %c0_29] : memref<1x4x2x128xf32, #tpu.memory_space<vmem>>, vector<1x1x2x128xf32>
    %41 = vector.shape_cast %40 : vector<1x1x2x128xf32> to vector<2x128xf32>
    %42 = arith.subf %41, %21 : vector<2x128xf32>
    %43 = math.exp %42 : vector<2x128xf32>
    %44 = arith.addf %36, %43 : vector<2x128xf32>
    %c2_i32_30 = arith.constant 2 : i32
    %45 = vector.broadcast %c2_i32_30 : i32 to vector<2x128xi32>
    %46 = arith.cmpi eq, %1, %45 : vector<2x128xi32>
    %47 = arith.select %46, %41, %39 : vector<2x128xi1>, vector<2x128xf32>
    %c0_31 = arith.constant 0 : index
    %c3_32 = arith.constant 3 : index
    %c0_33 = arith.constant 0 : index
    %c0_34 = arith.constant 0 : index
    %48 = vector.load %arg2[%c0_31, %c3_32, %c0_33, %c0_34] : memref<1x4x2x128xf32, #tpu.memory_space<vmem>>, vector<1x1x2x128xf32>
    %49 = vector.shape_cast %48 : vector<1x1x2x128xf32> to vector<2x128xf32>
    %50 = arith.subf %49, %21 : vector<2x128xf32>
    %51 = math.exp %50 : vector<2x128xf32>
    %52 = arith.addf %44, %51 : vector<2x128xf32>
    %c3_i32 = arith.constant 3 : i32
    %53 = vector.broadcast %c3_i32 : i32 to vector<2x128xi32>
    %54 = arith.cmpi eq, %1, %53 : vector<2x128xi32>
    %55 = arith.select %54, %49, %47 : vector<2x128xi1>, vector<2x128xf32>
    %56 = math.log %52 : vector<2x128xf32>
    %57 = arith.addf %21, %56 : vector<2x128xf32>
    %58 = arith.subf %57, %55 : vector<2x128xf32>
    %cst_35 = arith.constant 0.000000e+00 : f32
    %59 = vector.broadcast %cst_35 : f32 to vector<2x128xf32>
    %60 = arith.select %10, %58, %59 : vector<2x128xi1>, vector<2x128xf32>
    %61 = arith.extui %10 : vector<2x128xi1> to vector<2x128xi32>
    %62 = arith.sitofp %61 : vector<2x128xi32> to vector<2x128xf32>
    %63 = vector.shape_cast %60 : vector<2x128xf32> to vector<1x2x128xf32>
    %cst_36 = arith.constant dense<0.000000e+00> : vector<1xf32>
    %64 = vector.multi_reduction <add>, %63, %cst_36 [1, 2] : vector<1x2x128xf32> to vector<1xf32>
    %65 = vector.shape_cast %64 : vector<1xf32> to vector<1x1x1xf32>
    %66 = vector.extract %65[0, 0, 0] : f32 from vector<1x1x1xf32>
    %67 = vector.broadcast %66 : f32 to vector<1x1x1x128xf32>
    %c0_37 = arith.constant 0 : index
    %c0_38 = arith.constant 0 : index
    %c0_39 = arith.constant 0 : index
    %c0_40 = arith.constant 0 : index
    %68 = vector.load %arg5[%c0_37, %c0_38, %c0_39, %c0_40] : memref<1x1x1x128xf32, #tpu.memory_space<vmem>>, vector<1x1x1x128xf32>
    tpu.vector_store %arg5[%c0_37, %c0_38, %c0_39, %c0_40], %67 {strides = array<i32>} : memref<1x1x1x128xf32, #tpu.memory_space<vmem>>, vector<1x1x1x128xf32>,
    %69 = vector.shape_cast %62 : vector<2x128xf32> to vector<1x2x128xf32>
    %cst_41 = arith.constant dense<0.000000e+00> : vector<1xf32>
    %70 = vector.multi_reduction <add>, %69, %cst_41 [1, 2] : vector<1x2x128xf32> to vector<1xf32>
    %71 = vector.shape_cast %70 : vector<1xf32> to vector<1x1x1xf32>
    %72 = vector.extract %71[0, 0, 0] : f32 from vector<1x1x1xf32>
    %73 = vector.broadcast %72 : f32 to vector<1x1x1x128xf32>
    %c0_42 = arith.constant 0 : index
    %c0_43 = arith.constant 0 : index
    %c0_44 = arith.constant 0 : index
    %c0_45 = arith.constant 0 : index
    %74 = vector.load %arg6[%c0_42, %c0_43, %c0_44, %c0_45] : memref<1x1x1x128xf32, #tpu.memory_space<vmem>>, vector<1x1x1x128xf32>
    tpu.vector_store %arg6[%c0_42, %c0_43, %c0_44, %c0_45], %73 {strides = array<i32>} : memref<1x1x1x128xf32, #tpu.memory_space<vmem>>, vector<1x1x1x128xf32>,
    return
  }
  func.func @transform_0(%arg0: i32, %arg1: i32) -> (i32, i32, i32, i32) {
    %c0_i32 = arith.constant 0 : i32
    %c0_i32_0 = arith.constant 0 : i32
    %c0_i32_1 = arith.constant 0 : i32
    return %arg0, %c0_i32, %arg1, %c0_i32_0 : i32, i32, i32, i32
  }
  func.func @transform_1(%arg0: i32, %arg1: i32) -> (i32, i32, i32, i32) {
    %c0_i32 = arith.constant 0 : i32
    %c0_i32_0 = arith.constant 0 : i32
    %c0_i32_1 = arith.constant 0 : i32
    return %arg0, %c0_i32, %arg1, %c0_i32_0 : i32, i32, i32, i32
  }
  func.func @transform_2(%arg0: i32, %arg1: i32) -> i32 {
    %c0_i32 = arith.constant 0 : i32
    %c0_i32_0 = arith.constant 0 : i32
    return %c0_i32 : i32
  }
  func.func @transform_3(%arg0: i32, %arg1: i32) -> (i32, i32, i32, i32) {
    %c0_i32 = arith.constant 0 : i32
    %c0_i32_0 = arith.constant 0 : i32
    %c0_i32_1 = arith.constant 0 : i32
    return %arg0, %arg1, %c0_i32, %c0_i32_0 : i32, i32, i32, i32
  }
  func.func @transform_4(%arg0: i32, %arg1: i32) -> (i32, i32, i32, i32) {
    %c0_i32 = arith.constant 0 : i32
    %c0_i32_0 = arith.constant 0 : i32
    %c0_i32_1 = arith.constant 0 : i32
    return %arg0, %arg1, %c0_i32, %c0_i32_0 : i32, i32, i32, i32
  }
}

</mosaic_0001>

<bundles_post_ra>
// kernel: tpu_custom_call.1
= control target key start
LH: loop header
LB: loop body
LE: loop exit
PB: predicated region body
PF: predicated region fallthrough
CT: control target
= control target key end

     0   :  { %s1086_s0 = inlined_call_operand.hbm [shape: f32[2,4,2,128], index: 0, kind: input, shape index: {}]   ;;  %s1087_s1 = inlined_call_operand.hbm [shape: s32[2,1,2,128], index: 1, kind: input, shape index: {}]   ;;  %s1088_s2 = inlined_call_operand.vmem [shape: f32[4], index: 2, kind: input, shape index: {}]   ;;  %s1089_s3 = inlined_call_operand.hbm [shape: f32[2,1,1,128], index: 3, kind: output, shape index: {0}]   ;;  %s1090_s4 = inlined_call_operand.hbm [shape: f32[2,1,1,128], index: 4, kind: output, shape index: {1}]  }
   0x1   :  { %1095 = sst [smem:[#allocation20_spill]] %s1088_s2 }
   0x2   :  { %10 = vsyncpa [#allocation3], 0 }
   0x3   :  { %12 = vsyncpa [#allocation3 + $0x1], 0 }
   0x4   :  { %13 = vsyncpa [#allocation7], 0 }
   0x5   :  { %15 = vsyncpa [#allocation7 + $0x1], 0 }
   0x6   :  { %16 = vsyncpa [#allocation5], 0 }
   0x7   :  { %17 = vsyncpa [#allocation4], 0 }
   0x8   :  { %19 = vsyncpa [#allocation4 + $0x1], 0 }
   0x9   :  { %20 = vsyncpa [#allocation11], 0 }
   0xa   :  { %22 = vsyncpa [#allocation11 + $0x1], 0  ;;  %s900_s15 = smov 0   ;;  %s902_s16 = smov 0  }
   0xb   :  { %s904_s17 = smov 0   ;;  %s906_s18 = smov 0  }
   0xc   :  { %s908_s19 = smov 0   ;;  %s910_s20 = smov 0  }
   0xd LB: > { %1096 = sst [smem:[#allocation17_spill]] %s869_s20  ;;  %s551_s21 = sadd.s32 4294967295, %s869_s20   ;;  %s869_s20 = sphi %s910_s20, %s28_s20   ;;  %s865_s19 = sphi %s908_s19, %s1114_s19   ;;  %s861_s18 = sphi %s906_s18, %s1113_s18   ;;  %s857_s17 = sphi %s904_s17, %s1112_s17   ;;  %s853_s16 = sphi %s902_s16, %s1111_s16   ;;  %s849_s15 = sphi %s900_s15, %s1110_s15  }
   0xe   : > { %s552_s22 = sadd.s32 4294967294, %s869_s20   ;;  %s49_s23 = sadd.s32 1, %s857_s17 }
   0xf   : > { %p56_p0 = scmp.ne.s32.totalorder %s857_s17, %s853_s16  ;;  %p57_p1 = scmp.eq.s32.totalorder %s869_s20, 0 }
  0x10   : > { %p62_p2 = scmp.ne.s32.totalorder %s853_s16, %s849_s15  ;;  %p938_p3 = scmp.eq.s32.totalorder %s551_s21, 0 }
  0x11   : > { %p137_p4 = scmp.eq.s32.totalorder %s551_s21, 1  ;;  %p942_p5 = por %p57_p1, %p56_p0 }
  0x12   : > { %p143_p6 = scmp.eq.s32.totalorder %s552_s22, 1  ;;  %p948_p7 = por %p938_p3, %p62_p2 }
  0x13   : > { %p952_p8 = por %p137_p4, %p56_p0  ;;  %p553_p10 = scmp.ge.s32.totalorder %s869_s20, 1 }
  0x14   : > { %p956_p9 = por %p143_p6, %p62_p2  ;;  %p178_p11 = scmp.lt.s32.totalorder %s869_s20, 3 }
  0x15   : > { %s1103_s2 = sld [smem:[#allocation20_spill]]  ;;  %p555_p13 = scmp.ge.s32.totalorder %s869_s20, 2 }
  0x16   : > { %s1101_s28 = scalar_select %p956_p9, 1, 0 }
  0x17   : > { %p965_p12 = pnand %p553_p10, %p178_p11  ;;  %p607_p0 = scmp.lt.s32.totalorder %s869_s20, 2 }
  0x18   : > { %1102 = sst [smem:[#allocation18_spill]] %s1101_s28  ;;  %s40_s8 = sadd.s32 1, %s865_s19 }
  0x19   : > { %p588_p1 = pneg %p965_p12  ;;  %p975_p2 = pnand %p607_p0, %p942_p5 }
  0x1a   : > { %p42_p6 = scmp.ge.s32.totalorder %s40_s8, 2  ;;  %s983_s9 = sand.u32 1, %s857_s17  }
  0x1b   : > { %s190_s5 = sshll.u32 %s1103_s2, 4  ;;  %p589_p4 = pnand %p588_p1, %p938_p3  ;;  %s191_s5 = int_to_ptr.vmem [resolvable:$true] %s190_s5 }
  0x1c   : > { %s871_s10 = smov [#allocation8]   ;;  %s1116_s8 = smov (%p42_p6, %s40_s8), 0 }
  0x1d   : > { %591 = dma.vmem_to_smem (!%p589_p4), %s191_s5, 16, %s871_s10, [#allocation5]  }
  0x1e   : > { %1106 = sst [smem:[#allocation19_spill]] %s1116_s8  ;;  %s556_s11 = sshll.u32 %s983_s9, 3 }
  0x1f   : > { %s44_s12 = ssub.s32 %s865_s19, %s1116_s8  ;;  %s571_s13 = sshll.u32 %s865_s19, 3 }
  0x20   : > { %p47_p5 = scmp.eq.s32.totalorder %s44_s12, 0  ;;  %s211_s22 = scalar_lea.hbm %s1086_s0, %s571_s13 }
  0x21   : > { %s205_s25 = scalar_lea.vmem [#allocation2], %s556_s11  ;;  %s212_s5 = sshll.u32 %s211_s22, 4  ;;  %s213_s5 = int_to_ptr.hbm [resolvable:$true] %s212_s5 }
  0x22   : > { %s214_s29 = sshll.u32 %s205_s25, 4  ;;  %s202_s10 = scalar_lea.sflag [#allocation3], %s983_s9  ;;  %s215_s29 = int_to_ptr.vmem [resolvable:$true] %s214_s29 }
  0x23   : > { %s997_s30 = scalar_select %p47_p5, %s857_s17, %s49_s23  }
  0x24   : > { %s872_s2 = smov 32   ;;  %s873_s20 = smov 2  }
  0x25   : > { %595 = dma.hbm_to_vmem [thread:$0]  (!%p975_p2), %s213_s5, 128, %s215_s29, %s202_s10, %s872_s2, %s872_s2, %s873_s20  }
  0x26   : > { %s559_s12 = sshll.u32 %s983_s9, 1  ;;  %s560_s8 = sshll.u32 %s865_s19, 1 }
  0x27   : > { %s233_s11 = scalar_lea.hbm %s1087_s1, %s560_s8  ;;  %s228_s21 = scalar_lea.vmem [#allocation6], %s559_s12 }
  0x28   : > { %s235_s13 = sshll.u32 %s233_s11, 4  ;;  %s237_s23 = sshll.u32 %s228_s21, 4  ;;  %s236_s13 = int_to_ptr.hbm [resolvable:$true] %s235_s13  ;;  %s238_s23 = int_to_ptr.vmem [resolvable:$true] %s237_s23 }
  0x29   : > { %s225_s22 = scalar_lea.sflag [#allocation7], %s983_s9  ;;  %246 = sbr.rel (%p965_p12) target bundleno = 290 (0x122), region = 32 }
  0x2a   : > { %598 = dma.hbm_to_vmem [thread:$0]  (!%p975_p2), %s236_s13, 32, %s238_s23, %s225_s22  }
  0x2b   : > { %s1013_s2 = sand.u32 (!%p965_p12), 1, %s853_s16  }
  0x2c   : > { %s562_s20 = sshll.u32 (!%p965_p12), %s1013_s2, 3  ;;  %s249_s28 = scalar_lea.sflag (!%p965_p12), [#allocation3], %s1013_s2 }
  0x2d   : > { %s252_s8 = scalar_lea.vmem (!%p965_p12), [#allocation2], %s562_s20 }
  0x2e   : > { %828 = dma.done.wait (%p948_p7), %s249_s28, 128  }
  0x2f   : > { %830 = vsyncadd (%p948_p7), %s249_s28, 4294967168  ;;  %s563_s7 = sshll.u32 %s1013_s2, 1  ;;  %s259_s6 = scalar_lea.sflag [#allocation7], %s1013_s2 }
  0x30   : > { %s262_s9 = scalar_lea.vmem [#allocation6], %s563_s7 }
  0x31   : > { %832 = dma.done.wait (%p948_p7), %s259_s6, 32  }
  0x32   : > { %834 = vsyncadd (%p948_p7), %s259_s6, 4294967264 }
  0x33   : > { %836 = dma.done.wait (%p938_p3), [#allocation5], 16  }
  0x34   : > { %838 = vsyncadd (%p938_p3), [#allocation5], 4294967280 }
  0x35   : > { %273 = sfence }
  0x36   : > { %v311_v0 = vld [vmem:[%s252_s8] sm:$0x3]  ;;  %v565_v1 = vld [vmem:[%s252_s8 + $0x2] sm:$0x3]  ;;  %v566_v3 = vld [vmem:[%s252_s8 + $0x4] sm:$0x3]  ;;  %v304_v23 = vlaneseq  ;;  %s391_s25 = scalar_lea.hbm %s1089_s3, %s861_s18  ;;  %s405_s13 = scalar_lea.hbm %s1090_s4, %s861_s18 }
  0x37   : > { %v314_v2 = vmax.f32 %v311_v0, %v565_v1  ;;  %v567_v4 = vld [vmem:[%s252_s8 + $0x6] sm:$0x3]  ;;  %v302_v17 = vld [vmem:[%s262_s9] sm:$0x3]  ;;  %vm352_vm7 = vcmask 1041408   ;;  %v874_v35 = vmov 0.0  }
  0x38   : > { %vm325_vm0 = vcmp.eq.s32.totalorder %v302_v17, 0  ;;  %vm331_vm1 = vcmp.eq.s32.totalorder %v302_v17, 1  ;;  %vm337_vm2 = vcmp.eq.s32.totalorder %v302_v17, 2  ;;  %v305_v26 = vshrl.u32 %v304_v23, 7  ;;  %s295_s29 = scalar_lea.vmem [#allocation9], %s1013_s2  ;;  %s395_s10 = sshll.u32 %s391_s25, 4  ;;  %s396_s10 = int_to_ptr.hbm [resolvable:$true] %s395_s10 }
  0x39   : > { %v317_v5 = vmax.f32 %v314_v2, %v566_v3  ;;  %v326_v24 = vsel %vm325_vm0, %v311_v0, 0.0  ;;  %vm343_vm3 = vcmp.eq.s32.totalorder %v302_v17, 3  ;;  %vm309_vm5 = vcmp.ne.s32.totalorder %v302_v17, 4294967196  ;;  %s393_s5 = sshll.u32 %s295_s29, 4  ;;  %s378_s21 = scalar_lea.sflag [#allocation4], %s1013_s2  ;;  %s394_s5 = int_to_ptr.vmem [resolvable:$true] %s393_s5 }
  0x3a   : > { %v332_v25 = vsel %vm331_vm1, %v565_v1, %v326_v24  ;;  %vm308_vm4 = vcmp.lt.s32.totalorder %v305_v26, 2  ;;  %s761_s23 = sshra.s32 %s396_s10, 4  ;;  %s767_s8 = scalar_lea.hbm %s1089_s3, 2  ;;  %s762_s23 = int_to_ptr.hbm [resolvable:$true] %s761_s23 }
  0x3b   : > { %v320_v6 = vmax.f32 %v317_v5, %v567_v4  ;;  %v338_v27 = vsel %vm337_vm2, %v566_v3, %v332_v25  ;;  %vm310_vm6 = vmand %vm308_vm4, %vm309_vm5  ;;  %s763_s22 = scalar_lea.hbm %s762_s23, 1  ;;  %p768_p11 = scmp.lt.s32.totalorder %s762_s23, %s1089_s3 }
  0x3c   : > { %v344_v30 = vsel %vm343_vm3, %v567_v4, %v338_v27  ;;  %v568_v36 = vsel %vm310_vm6, 1.0, %v874_v35  ;;  %p764_p3 = scmp.ne.s32.totalorder %s762_s23, %s763_s22  ;;  %p769_p12 = scmp.lt.s32.totalorder %s767_s8, %s763_s22 }
  0x3d   : > { %v321_v7 = vsub.f32 %v311_v0, %v320_v6  ;;  %v327_v8 = vsub.f32 %v565_v1, %v320_v6  ;;  %v333_v9 = vsub.f32 %v566_v3, %v320_v6  ;;  %v339_v10 = vsub.f32 %v567_v4, %v320_v6 }
  0x3e   : > { %v365_v37 = vsel %vm352_vm7, %v568_v36, 0.0  ;;  %p765_p7 = pnand %p764_p3, %p952_p8  ;;  %p770_p0 = por %p769_p12, %p768_p11 }
  0x3f   : > { %v322_v11 = vmul.f32 1.442695, %v321_v7  ;;  %v328_v12 = vmul.f32 1.442695, %v327_v8  ;;  %v334_v13 = vmul.f32 1.442695, %v333_v9 }
  0x40   : > { %v340_v14 = vmul.f32 1.442695, %v339_v10  ;;  %p766_p10 = pneg %p765_p7 }
  0x41   : > { %662 = vpow2.f32 %v322_v11 }
  0x42   : > { %664 = vpow2.f32 %v328_v12  ;;  %p771_p1 = pnand %p770_p0, %p766_p10 }
  0x43   : > { %666 = vpow2.f32 %v334_v13 }
  0x44   : > { %668 = vpow2.f32 %v340_v14 }
  0x47   : > { %v663_v15 = vpop.eup %662 }
  0x48   : > { %v665_v16 = vpop.eup %664 }
  0x49   : > { %v667_v18 = vpop.eup %666  ;;  %v330_v19 = vadd.f32 %v665_v16, %v663_v15 }
  0x4a   : > { %v669_v20 = vpop.eup %668 }
  0x4b   : > { %v336_v21 = vadd.f32 %v667_v18, %v330_v19 }
  0x4d   : > { %v342_v22 = vadd.f32 %v669_v20, %v336_v21 }
  0x4f   : > { %670 = vlog2.f32 %v342_v22 }
  0x55   : > { %v671_v28 = vpop.eup %670 }
  0x56   : > { %v346_v29 = vmul.f32 0.6931472, %v671_v28 }
  0x58   : > { %v347_v31 = vadd.f32 %v346_v29, %v320_v6 }
  0x5a   : > { %v348_v32 = vsub.f32 %v347_v31, %v344_v30 }
  0x5c   : > { %v349_v33 = vsel %vm310_vm6, %v348_v32, 0.0 }
  0x5d   : > { %v353_v34 = vsel %vm352_vm7, %v349_v33, 0.0 }
  0x5e   : > { %354 = vadd.xlane.f32.xlu0 %v353_v34 }
  0x66   : > { %366 = vadd.xlane.f32.xlu0 %v365_v37 }
  0xd1   : > { %v355_v38 = vpop.xlane.xlu0 %354 }
  0xd2   : > { %v356_v39 = vrot.slane %v355_v38, 4 }
  0xd4   : > { %v357_v40 = vadd.f32 %v356_v39, %v355_v38 }
  0xd6   : > { %v358_v41 = vrot.slane %v357_v40, 2 }
  0xd8   : > { %v359_v42 = vadd.f32 %v358_v41, %v357_v40 }
  0xd9   : > { %v367_v43 = vpop.xlane.xlu0 %366 }
  0xda   : > { %v368_v44 = vrot.slane %v367_v43, 4  ;;  %v360_v45 = vrot.slane %v359_v42, 1 }
  0xdc   : > { %v369_v46 = vadd.f32 %v368_v44, %v367_v43  ;;  %v361_v47 = vadd.f32 %v360_v45, %v359_v42 }
  0xde   : > { %v370_v48 = vrot.slane %v369_v46, 2  ;;  %572 = vpush %v361_v47 }
  0xe0   : > { %v371_v49 = vadd.f32 %v370_v48, %v369_v46 }
  0xe2   : > { %v372_v50 = vrot.slane %v371_v49, 1 }
  0xe4   : > { %v373_v51 = vadd.f32 %v372_v50, %v371_v49 }
  0xe6   : > { %574 = vpush %v373_v51 }
 0x10f   : > { %s573_s12 = spop %572 }
 0x110   : > { %v363_v52 = vstv %s573_s12 }
 0x111   : > { %364 = vst [vmem:[%s295_s29] sm:$0x1] %v363_v52 }
 0x112   : > { %774 = shalt.err (!%p771_p1)
}
 0x113   : > { %584 = dma.vmem_to_hbm [thread:$0]  (%p952_p8), %s394_s5, 16, %s396_s10, %s378_s21  }
 0x114   : > { %s301_s18 = scalar_lea.vmem [#allocation10], %s1013_s2  ;;  %s409_s24 = sshll.u32 %s405_s13, 4  ;;  %s410_s24 = int_to_ptr.hbm [resolvable:$true] %s409_s24 }
 0x115   : > { %s407_s9 = sshll.u32 %s301_s18, 4  ;;  %s382_s25 = scalar_lea.sflag [#allocation11], %s1013_s2  ;;  %s408_s9 = int_to_ptr.vmem [resolvable:$true] %s407_s9 }
 0x116   : > { %s789_s29 = sshra.s32 %s410_s24, 4  ;;  %s795_s5 = scalar_lea.hbm %s1090_s4, 2  ;;  %s790_s29 = int_to_ptr.hbm [resolvable:$true] %s789_s29 }
 0x117   : > { %s575_s26 = spop %574  ;;  %s791_s12 = scalar_lea.hbm %s790_s29, 1 }
 0x118   : > { %v375_v53 = vstv %s575_s26  ;;  %p792_p2 = scmp.ne.s32.totalorder %s790_s29, %s791_s12  ;;  %p796_p5 = scmp.lt.s32.totalorder %s790_s29, %s1090_s4 }
 0x119   : > { %376 = vst [vmem:[%s301_s18] sm:$0x1] %v375_v53  ;;  %p797_p3 = scmp.lt.s32.totalorder %s795_s5, %s791_s12 }
 0x11a   : > { %p793_p4 = pnand %p792_p2, %p952_p8 }
 0x11b   : > { %p798_p7 = por %p797_p3, %p796_p5 }
 0x11c   : > { %p794_p6 = pneg %p793_p4 }
 0x11e   : > { %p799_p10 = pnand %p798_p7, %p794_p6 }
 0x120   : > { %802 = shalt.err (!%p799_p10)
}
 0x121   : > { %585 = dma.vmem_to_hbm [thread:$0]  (%p952_p8), %s408_s9, 16, %s410_s24, %s382_s25  }
 0x122 PF: > { %s1108_s13 = sld [smem:[#allocation17_spill]]  ;;  %s421_s23 = sand.u32 1, %s849_s15  }
 0x123   : > { %p600_p11 = pnand %p555_p13, %p956_p9  ;;  %s422_s22 = scalar_lea.sflag [#allocation4], %s421_s23 }
 0x125   : > { %p601_p12 = pneg %p600_p11 }
 0x127   : > { %840 = dma.done.wait (%p601_p12), %s422_s22, 16  }
 0x128   : > { %842 = vsyncadd (%p601_p12), %s422_s22, 4294967280  ;;  %s431_s20 = scalar_lea.sflag [#allocation11], %s421_s23 }
 0x129   : > { %844 = dma.done.wait (%p601_p12), %s431_s20, 16  }
 0x12a   : > { %846 = vsyncadd (%p601_p12), %s431_s20, 4294967280  ;;  %s28_s20 = sadd.s32 1, %s1108_s13   ;;  %s1109_s27 = sld [smem:[#allocation19_spill]] }
 0x12b   : > { %p25_p0 = scmp.ge.s32.totalorder %s28_s20, 4   ;;  %s1110_s15 = smov %s853_s16 }
 0x12c   : > { %s1111_s16 = smov %s857_s17  ;;  %s1112_s17 = smov %s997_s30 }
 0x12d   : > { %s1113_s18 = smov %s865_s19  ;;  %27 = sbr.rel (!%p25_p0) target bundleno = 13 (0xd), region = 115 }
 0x130   : > { %s1114_s19 = smov %s1109_s27 }
 0x132   :  { %436 = vsyncpa [#allocation3], 1 }
 0x133   :  { %438 = vsyncpa [#allocation3 + $0x1], 1 }
 0x134   :  { %439 = vsyncpa [#allocation7], 1 }
 0x135   :  { %441 = vsyncpa [#allocation7 + $0x1], 1 }
 0x136   :  { %442 = vsyncpa [#allocation4], 1 }
 0x137   :  { %444 = vsyncpa [#allocation4 + $0x1], 1 }
 0x138   :  { %445 = vsyncpa [#allocation11], 1 }
 0x139   :  { %447 = vsyncpa [#allocation11 + $0x1], 1 }
 0x13a   :  { %448 = vsyncpa [#allocation5], 1 }
 0x13b   :  { %450 = vsyncpa [#allocation5 + $0x1], 1 }

</bundles_post_ra>
